<compile_context>
chip_gen: v6e
topology: v6e:2x2x1
jax: 0.10.0
libtpu: 0.0.40
codegen_flags: <defaults>
</compile_context>

<pallas_src>
import functools
from math import sqrt

import jax
import jax.numpy as jnp
from jax.experimental import pallas as pl
from jax.experimental.pallas import tpu as pltpu


def _round_up(x: int, m: int) -> int:
    return ((x + m - 1) // m) * m


def _balanced_tile(dim: int, max_tile: int, align: int) -> int:
    """Largest ~balanced tile (<= max_tile, multiple of `align`) covering `dim`."""
    if dim <= 0:
        return align
    n_blocks = pl.cdiv(dim, max_tile)
    tile = _round_up(pl.cdiv(dim, n_blocks), align)
    return min(tile, _round_up(dim, align))


def _default_tile_config():
    """(tm, tn, tk, vmem_limit_bytes, n_tensorcores) for the current TPU gen."""
    vmem_bytes = 64 * 1024 * 1024
    try:
        info = pltpu.get_tpu_info()
        vmem_bytes = getattr(info, "vmem_capacity_bytes", None) or vmem_bytes
    except Exception:
        pass
    if vmem_bytes >= 100 * 1024 * 1024:
        # v5e / v6e: 128 MiB physical VMEM, single TensorCore.
        # bf16 tiles: 2*(tm*tk + tk*tn)*2B + 2*tm*tn*4B ~= 38 MiB.
        return 1536, 2048, 1024, 100 * 1024 * 1024, 1
    # v7x: 64 MiB VMEM per TensorCore, 2 TCs per chip.  ~16 MiB of tiles,
    # well under the ~48 MiB budget (leaves Mosaic internal scratch headroom).
    return 1024, 1024, 1024, 48 * 1024 * 1024, 2


def _linear_kernel_f32out(x_ref, w_ref, o_ref):
    """Accumulate straight into the (f32) output tile; no scratch needed."""
    k = pl.program_id(2)
    prod = jnp.dot(x_ref[...], w_ref[...], preferred_element_type=jnp.float32)

    @pl.when(k == 0)
    def _():
        o_ref[...] = prod

    @pl.when(k != 0)
    def _():
        o_ref[...] += prod


def _linear_kernel_acc(x_ref, w_ref, o_ref, acc_ref):
    """f32 scratch accumulator; used only when the output dtype is not f32."""
    @pl.when(pl.program_id(2) == 0)
    def _():
        acc_ref[...] = jnp.zeros_like(acc_ref)

    acc_ref[...] += jnp.dot(x_ref[...], w_ref[...], preferred_element_type=jnp.float32)

    @pl.when(pl.program_id(2) == pl.num_programs(2) - 1)
    def _():
        o_ref[...] = acc_ref[...].astype(o_ref.dtype)


@functools.partial(jax.jit, static_argnames=("tm", "tn", "tk", "use_bf16"))
def linear_forward(x, weight, *, tm=None, tn=None, tk=None, use_bf16=True):
    """x: [..., in_features], weight: [in_features, out_features] -> [..., out_features].

    use_bf16=True feeds the MXU bf16 operands (f32 accumulation) — ~1e-2
    relative error vs strict fp32 but multi-x faster.  use_bf16=False keeps
    exact fp32 operand semantics.
    """
    in_features, out_features = weight.shape
    lead_shape = x.shape[:-1]
    m = 1
    for d in lead_shape:
        m *= d
    x2d = x.reshape(m, in_features)
    out_dtype = x.dtype

    tm_d, tn_d, tk_d, vmem_limit, n_cores = _default_tile_config()
    tm = tm_d if tm is None else tm
    tn = tn_d if tn is None else tn
    tk = tk_d if tk is None else tk

    # Balanced, (8,128)-aligned effective tiles (sublane dims %8, lane dims %128).
    tm_eff = _balanced_tile(m, tm, 8)
    tn_eff = _balanced_tile(out_features, tn, 128)
    tk_eff = _balanced_tile(in_features, tk, 128)

    # v7x has 2 TensorCores: make sure the parallel (M, N) grid has >= 2
    # blocks when the problem allows it, so both cores get work.
    if n_cores >= 2 and pl.cdiv(m, tm_eff) == 1 and pl.cdiv(out_features, tn_eff) == 1:
        if out_features > 128:
            tn_eff = _round_up(pl.cdiv(out_features, 2), 128)
        elif m > 8:
            tm_eff = _round_up(pl.cdiv(m, 2), 8)

    # MXU operand dtype.
    op_dtype = jnp.bfloat16 if use_bf16 else x.dtype
    x_in = x2d.astype(op_dtype)
    w_in = weight.astype(op_dtype)

    # Only K needs explicit zero padding: garbage in a K tail would corrupt
    # real outputs.  Non-divisible M/N grids are handled by Pallas directly
    # (OOB output writes are masked; garbage only lands in discarded rows/cols),
    # so no jnp.pad / slice round-trips for M and N.
    kp = _round_up(in_features, tk_eff)
    if kp != in_features:
        x_in = jnp.pad(x_in, ((0, 0), (0, kp - in_features)))
        w_in = jnp.pad(w_in, ((0, kp - in_features), (0, 0)))

    grid = (pl.cdiv(m, tm_eff), pl.cdiv(out_features, tn_eff), kp // tk_eff)
    mp = grid[0] * tm_eff
    np_ = grid[1] * tn_eff

    op_bytes = jnp.dtype(op_dtype).itemsize
    out_bytes = jnp.dtype(out_dtype).itemsize
    cost = pl.CostEstimate(
        flops=2 * mp * np_ * kp,
        bytes_accessed=mp * kp * op_bytes + kp * np_ * op_bytes + mp * np_ * out_bytes,
        transcendentals=0,
    )

    if out_dtype == jnp.float32:
        kernel = _linear_kernel_f32out
        scratch = []
    else:
        kernel = _linear_kernel_acc
        scratch = [pltpu.VMEM((tm_eff, tn_eff), jnp.float32)]

    out2d = pl.pallas_call(
        kernel,
        out_shape=jax.ShapeDtypeStruct((m, out_features), out_dtype),
        grid=grid,
        in_specs=[
            pl.BlockSpec((tm_eff, tk_eff), lambda i, j, k: (i, k)),
            pl.BlockSpec((tk_eff, tn_eff), lambda i, j, k: (k, j)),
        ],
        out_specs=pl.BlockSpec((tm_eff, tn_eff), lambda i, j, k: (i, j)),
        scratch_shapes=scratch,
        compiler_params=pltpu.CompilerParams(
            dimension_semantics=("parallel", "parallel", "arbitrary"),
            vmem_limit_bytes=vmem_limit,
        ),
        cost_estimate=cost,
    )(x_in, w_in)

    return out2d.reshape(*lead_shape, out_features)


def init_linear_params(key, in_features, out_features):
    # Mirror the *given* PyTorch module exactly: stdv = 1/sqrt(weight.size(1))
    # = 1/sqrt(out_features) (this module deviates from nn.Linear's fan-in on purpose).
    stdv = 1.0 / sqrt(out_features)
    weight = jax.random.uniform(
        key, (in_features, out_features), dtype=jnp.float32,
        minval=-stdv, maxval=stdv,
    )
    return weight


if __name__ == "__main__":
    key = jax.random.PRNGKey(0)
    k_x, k_w = jax.random.split(key)

    batch, seq, in_features, out_features = 2, 8, 32, 32
    x = jax.random.normal(k_x, (batch, seq, in_features), dtype=jnp.float32)
    weight = init_linear_params(k_w, in_features, out_features)

    # Default path: bf16 MXU operands, f32 accumulation.
    out = linear_forward(x, weight)
    jax.block_until_ready(out)
    ref = jnp.matmul(x, weight)
    assert out.shape == (batch, seq, out_features)
    assert jnp.allclose(out, ref, atol=5e-2, rtol=5e-2)

    # Exact-fp32 path (strict PyTorch fp32 semantics).
    out_f32 = linear_forward(x, weight, use_bf16=False)
    jax.block_until_ready(out_f32)
    assert jnp.allclose(out_f32, ref, atol=1e-5, rtol=1e-5)

    # Larger, non-tile-aligned shape: exercises partial M/N blocks + K padding.
    k_x2, k_w2 = jax.random.split(jax.random.PRNGKey(1))
    x2 = jax.random.normal(k_x2, (3, 100, 384), dtype=jnp.float32)
    w2 = init_linear_params(k_w2, 384, 520)
    out2 = linear_forward(x2, w2)
    jax.block_until_ready(out2)
    ref2 = jnp.matmul(x2, w2)
    assert out2.shape == (3, 100, 520)
    assert jnp.allclose(out2, ref2, atol=5e-2, rtol=5e-2)

    print("KERNEL_OK")
</pallas_src>

<mosaic_0001>
module attributes {stable_mosaic.version = 11 : i64} {
  func.func @_linear_kernel_f32out(%arg0: i32, %arg1: i32, %arg2: i32, %arg3: memref<8x128xbf16, #tpu.memory_space<vmem>>, %arg4: memref<128x128xbf16, #tpu.memory_space<vmem>>, %arg5: memref<8x128xf32, #tpu.memory_space<vmem>>) attributes {dimension_semantics = [#tpu.dimension_semantics<parallel>, #tpu.dimension_semantics<parallel>, #tpu.dimension_semantics<arbitrary>], iteration_bounds = array<i64: 2, 1, 1>, scalar_prefetch = 0 : i64, scratch_operands = 0 : i64, tpu.core_type = #tpu.core_type<tc>, window_params = [{transform_indices = @transform_0, window_bounds = array<i64: 8, 128>}, {transform_indices = @transform_1, window_bounds = array<i64: 128, 128>}, {transform_indices = @transform_2, window_bounds = array<i64: 8, 128>}]} {
    %c0 = arith.constant 0 : index
    %c0_0 = arith.constant 0 : index
    %0 = vector.load %arg3[%c0, %c0_0] : memref<8x128xbf16, #tpu.memory_space<vmem>>, vector<8x128xbf16>
    %c0_1 = arith.constant 0 : index
    %c0_2 = arith.constant 0 : index
    %1 = vector.load %arg4[%c0_1, %c0_2] : memref<128x128xbf16, #tpu.memory_space<vmem>>, vector<128x128xbf16>
    %cst = arith.constant dense<0.000000e+00> : vector<8x128xf32>
    %2 = tpu.matmul %0, %1, %cst {dimension_numbers = #tpu.dot_dimension_numbers<[1], [0], [0], [1], [0, 0, 1, 1], [], []>} : vector<8x128xbf16>, vector<128x128xbf16>, vector<8x128xf32> -> vector<8x128xf32>
    %c0_i32 = arith.constant 0 : i32
    %3 = arith.cmpi eq, %arg2, %c0_i32 : i32
    %4 = arith.extui %3 : i1 to i32
    %c0_i32_3 = arith.constant 0 : i32
    %5 = arith.cmpi ne, %4, %c0_i32_3 : i32
    scf.if %5 {
      %c0_6 = arith.constant 0 : index
      %c0_7 = arith.constant 0 : index
      %9 = vector.load %arg5[%c0_6, %c0_7] : memref<8x128xf32, #tpu.memory_space<vmem>>, vector<8x128xf32>
      tpu.vector_store %arg5[%c0_6, %c0_7], %2 {strides = array<i32>} : memref<8x128xf32, #tpu.memory_space<vmem>>, vector<8x128xf32>,
    } else {
    }
    %c0_i32_4 = arith.constant 0 : i32
    %6 = arith.cmpi ne, %arg2, %c0_i32_4 : i32
    %7 = arith.extui %6 : i1 to i32
    %c0_i32_5 = arith.constant 0 : i32
    %8 = arith.cmpi ne, %7, %c0_i32_5 : i32
    scf.if %8 {
      %c0_6 = arith.constant 0 : index
      %c0_7 = arith.constant 0 : index
      %9 = vector.load %arg5[%c0_6, %c0_7] : memref<8x128xf32, #tpu.memory_space<vmem>>, vector<8x128xf32>
      %10 = arith.addf %9, %2 : vector<8x128xf32>
      %c0_8 = arith.constant 0 : index
      %c0_9 = arith.constant 0 : index
      %11 = vector.load %arg5[%c0_8, %c0_9] : memref<8x128xf32, #tpu.memory_space<vmem>>, vector<8x128xf32>
      tpu.vector_store %arg5[%c0_8, %c0_9], %10 {strides = array<i32>} : memref<8x128xf32, #tpu.memory_space<vmem>>, vector<8x128xf32>,
    } else {
    }
    return
  }
  func.func @transform_0(%arg0: i32, %arg1: i32, %arg2: i32) -> (i32, i32) {
    %c0_i32 = arith.constant 0 : i32
    return %arg0, %arg2 : i32, i32
  }
  func.func @transform_1(%arg0: i32, %arg1: i32, %arg2: i32) -> (i32, i32) {
    %c0_i32 = arith.constant 0 : i32
    return %arg2, %arg1 : i32, i32
  }
  func.func @transform_2(%arg0: i32, %arg1: i32, %arg2: i32) -> (i32, i32) {
    %c0_i32 = arith.constant 0 : i32
    return %arg0, %arg1 : i32, i32
  }
}

</mosaic_0001>

<bundles_post_ra>
// kernel: linear_forward.1
= control target key start
LH: loop header
LB: loop body
LE: loop exit
PB: predicated region body
PF: predicated region fallthrough
CT: control target
= control target key end

     0   :  { %7 = vsyncpa [#allocation3], 0  ;;  %s774_s0 = inlined_call_operand.vmem [shape: bf16[16,128], index: 0, kind: input, shape index: {}]   ;;  %s775_s1 = inlined_call_operand.vmem [shape: bf16[128,32], index: 1, kind: input, shape index: {}]   ;;  %s776_s2 = inlined_call_operand.hbm [shape: f32[16,32], index: 2, kind: output, shape index: {}]  }
   0x1   :  { %9 = vsyncpa [#allocation3 + $0x1], 0  ;;  %s639_s9 = smov 0   ;;  %s641_s10 = smov 0  }
   0x2   :  { %s643_s11 = smov 0   ;;  %s645_s12 = smov 0  }
   0x3   :  { %s647_s13 = smov 0   ;;  %s649_s14 = smov 0  }
   0x4 LB: > { %s429_s15 = sadd.s32 4294967295, %s619_s14   ;;  %s430_s16 = sadd.s32 4294967294, %s619_s14   ;;  %s619_s14 = sphi %s649_s14, %s15_s14   ;;  %s615_s13 = sphi %s647_s13, %s783_s13   ;;  %s611_s12 = sphi %s645_s12, %s782_s12   ;;  %s607_s11 = sphi %s643_s11, %s781_s11   ;;  %s603_s10 = sphi %s641_s10, %s780_s10   ;;  %s599_s9 = sphi %s639_s9, %s779_s9  }
   0x5   : > { %s34_s17 = sadd.s32 1, %s615_s13  ;;  %s99_s18 = sadd.s32 1, %s607_s11 }
   0x6   : > { %p36_p0 = scmp.ge.s32.totalorder %s34_s17, 2  ;;  %p109_p1 = scmp.ne.s32.totalorder %s607_s11, %s603_s10 }
   0x7   : > { %p110_p2 = scmp.eq.s32.totalorder %s429_s15, 1  ;;  %p115_p3 = scmp.ne.s32.totalorder %s603_s10, %s599_s9 }
   0x8   : > { %s785_s17 = smov (%p36_p0, %s34_s17), 0  ;;  %p116_p5 = scmp.eq.s32.totalorder %s430_s16, 1 }
   0x9   : > { %p679_p4 = por %p110_p2, %p109_p1  ;;  %s94_s20 = ssub.s32 %s615_s13, %s785_s17 }
   0xa   : > { %p434_p6 = scmp.ge.s32.totalorder %s619_s14, 1  ;;  %p97_p7 = scmp.eq.s32.totalorder %s94_s20, 0 }
   0xb   : > { %p686_p8 = por %p116_p5, %p115_p3  ;;  %p156_p9 = scmp.lt.s32.totalorder %s619_s14, 3 }
   0xc   : > { %s692_s22 = scalar_select %p97_p7, %s607_s11, %s99_s18  }
   0xd   : > { %p157_p10 = pnand %p434_p6, %p156_p9 }
   0xe   : > { %p188_p11 = scmp.lt.s32.totalorder (!%p157_p10), %s611_s12, 1  ;;  %s185_s26 = sand.u32 (!%p157_p10), 1, %s603_s10  }
   0xf   : > { %160 = sbr.rel (%p157_p10) target bundleno = 262 (0x106), region = 28  ;;  %s435_s27 = sshll.u32 (!%p157_p10), %s185_s26, 3 }
  0x10   : > { %s187_s28 = scalar_lea.vmem (!%p157_p10), [#allocation2], %s435_s27  ;;  %s446_s30 = sshll.u32 (!%p157_p10), %s611_s12, 7 }
  0x11   : > { %s337_s29 = sshll.u32 (!%p157_p10), %s187_s28, 4  ;;  %s730_s5 = scalar_lea.hbm (!%p157_p10), %s776_s2, %s446_s30  ;;  %s725_s29 = int_to_ptr.vmem [resolvable:$true] %s337_s29 }
  0x12   : > { %s323_s6 = scalar_lea.sflag (!%p157_p10), [#allocation3], %s185_s26 }
  0x14   : > { %v535_v0 = vld [vmem:[%s775_s1 + $0x38] sm:$0xff]   ;;  %v621_v1 = vmov 0.0   ;;  %v536_v2 = vld [vmem:[%s775_s1 + $0x30] sm:$0xff]   ;;  %vm622_vm0 = vmmov 0   ;;  %v537_v3 = vld [vmem:[%s775_s1 + $0x28] sm:$0xff]   ;;  %s189_s7 = scalar_select %p188_p11, %s611_s12, 1 }
  0x15   : > { %458 = vmatprep.subr.bf16.mxu0 %v621_v1  ;;  %474 = vmatprep.mubr.msk.bf16.mxu0 %vm622_vm0, %v621_v1  ;;  %v538_v4 = vld [vmem:[%s775_s1 + $0x20] sm:$0xff]   ;;  %v539_v5 = vld [vmem:[%s775_s1 + $0x18] sm:$0xff]   ;;  %v540_v6 = vld [vmem:[%s775_s1 + $0x10] sm:$0xff]   ;;  %s623_s12 = smov [#allocation2]  }
  0x16   : > { %459 = vmatpush3.bf16.msra.mxu0 %v535_v0  ;;  %v541_v7 = vld [vmem:[%s775_s1 + $0x8] sm:$0xff]   ;;  %s436_s16 = sshll.u32 %s189_s7, 2  ;;  %v542_v8 = vld [vmem:[%s775_s1] sm:$0xff]   ;;  %s543_s7 = scalar_lea.vmem %s725_s29, 128 }
  0x17   : > { %460 = vmatprep.subr.bf16.mxu0 %v621_v1  ;;  %s194_s25 = scalar_lea.vmem %s774_s0, %s436_s16  ;;  %p544_p12 = scmp.ne.s32.totalorder %s725_s29, %s543_s7 }
  0x18   : > { %v205_v9 = vld [vmem:[%s194_s25] sm:$0xf]  ;;  %s547_s8 = sshll.u32 %s623_s12, 4  ;;  %s548_s8 = int_to_ptr.vmem [resolvable:$false] %s547_s8 }
  0x19   : > { %p545_p13 = pnand %p544_p12, %p679_p4  ;;  %s549_s15 = scalar_lea.vmem %s548_s8, 256 }
  0x1a   : > { %461 = vmatpush3.bf16.msra.mxu0 %v536_v2  ;;  %p550_p1 = scmp.lt.s32.totalorder %s725_s29, %s548_s8  ;;  %p551_p2 = scmp.lt.s32.totalorder %s549_s15, %s543_s7 }
  0x1b   : > { %462 = vmatprep.subr.bf16.mxu0 %v621_v1  ;;  %p546_p0 = pneg %p545_p13 }
  0x1c   : > { %p552_p3 = por %p551_p2, %p550_p1 }
  0x1e   : > { %463 = vmatpush3.bf16.msra.mxu0 %v537_v3  ;;  %p553_p5 = pnand %p552_p3, %p546_p0 }
  0x1f   : > { %464 = vmatprep.subr.bf16.mxu0 %v621_v1 }
  0x22   : > { %465 = vmatpush3.bf16.msra.mxu0 %v538_v4 }
  0x23   : > { %466 = vmatprep.subr.bf16.mxu0 %v621_v1 }
  0x26   : > { %467 = vmatpush3.bf16.msra.mxu0 %v539_v5 }
  0x27   : > { %468 = vmatprep.subr.bf16.mxu0 %v621_v1 }
  0x2a   : > { %469 = vmatpush3.bf16.msra.mxu0 %v540_v6 }
  0x2b   : > { %470 = vmatprep.subr.bf16.mxu0 %v621_v1 }
  0x2e   : > { %471 = vmatpush3.bf16.msra.mxu0 %v541_v7 }
  0x2f   : > { %472 = vmatprep.subr.bf16.mxu0 %v621_v1 }
  0x32   : > { %473 = vmatpush3.bf16.msra.mxu0 %v542_v8 }
  0x35   : > { %475 = vmatmul.mubr.bf16.vlgmr.msra.gmra.mxu0 %v205_v9 }
  0xf5   : > { %v304_v10 = vpop.f32.mrf.mxu0 }
  0xf6   : > { %314 = vst [vmem:[%s187_s28] sm:$0xff] %v304_v10 }
  0xf7   : > { %v476_v11 = vpop.f32.mrf.mxu0 }
  0xf8   : > { %556 = shalt.err (!%p553_p5)
}
  0xf9   : > { %s557_s16 = scalar_lea.hbm %s730_s5, 128  ;;  %s561_s23 = scalar_lea.hbm %s776_s2, 256 }
  0xfa   : > { %p558_p6 = scmp.ne.s32.totalorder %s730_s5, %s557_s16  ;;  %p562_p10 = scmp.lt.s32.totalorder %s730_s5, %s776_s2 }
  0xfb   : > { %p563_p11 = scmp.lt.s32.totalorder %s561_s23, %s557_s16 }
  0xfc   : > { %p559_p7 = pnand %p558_p6, %p679_p4 }
  0xfd   : > { %p564_p12 = por %p563_p11, %p562_p10 }
  0xfe   : > { %p560_p9 = pneg %p559_p7 }
 0x100   : > { %p565_p13 = pnand %p564_p12, %p560_p9 }
 0x102   : > { %568 = shalt.err (!%p565_p13)
}
 0x103   : > { %478 = dma.vmem_to_hbm [thread:$0]  (%p679_p4), %s725_s29, 128, %s730_s5, %s323_s6   ;;  %v307_v12 = vpop.f32.mrf.mxu0 }
 0x105   : > { %v477_v13 = vpop.f32.mrf.mxu0 }
 0x106 PF: > { %p484_p0 = scmp.ge.s32.totalorder %s619_s14, 2  ;;  %s349_s26 = sand.u32 1, %s599_s9  }
 0x107   : > { %s350_s27 = scalar_lea.sflag [#allocation3], %s349_s26 }
 0x108   : > { %p481_p1 = pnand %p484_p0, %p686_p8 }
 0x10a   : > { %p482_p2 = pneg %p481_p1 }
 0x10c   : > { %594 = dma.done.wait (%p482_p2), %s350_s27, 128  }
 0x10d   : > { %596 = vsyncadd (%p482_p2), %s350_s27, 4294967168  ;;  %s15_s14 = sadd.s32 1, %s619_s14   ;;  %s779_s9 = smov %s603_s10 }
 0x10e   : > { %p12_p3 = scmp.ge.s32.totalorder %s15_s14, 4   ;;  %s780_s10 = smov %s607_s11 }
 0x10f   : > { %s781_s11 = smov %s692_s22  ;;  %s782_s12 = smov %s615_s13 }
 0x110   : > { %s783_s13 = smov %s785_s17  ;;  %14 = sbr.rel (!%p12_p3) target bundleno = 4 (0x4), region = 74 }
 0x115   :  { %355 = vsyncpa [#allocation3], 1 }
 0x116   :  { %357 = vsyncpa [#allocation3 + $0x1], 1 }

</bundles_post_ra>
